<compile_context>
chip_gen: v6e
topology: v6e:2x2x1
jax: 0.10.0
libtpu: 0.0.40
codegen_flags: <defaults>
</compile_context>

<pallas_src>
import jax
import jax.numpy as jnp
from jax.experimental import pallas as pl
from jax.experimental.pallas import tpu as pltpu


def _round_up(n, m):
    return -(-n // m) * m


def _cdiv(a, b):
    return -(-a // b)


def _choose_block_b(B, H, max_block=16384):
    """Pick the batch (lane) tile.

    - Cap so the [H, TB] f32 hidden intermediate stays around 8 MiB of VMEM
      (that tile, not the inputs, dominates the scoped-VMEM footprint).
    - Prefer exactly 2 tiles when the batch fits in <= 2*max_block so the
      'parallel' grid axis shards across both TensorCores on v7x.
    """
    budget = 8 * 1024 * 1024
    cap = max(128, (budget // (H * 4)) // 128 * 128)
    max_block = min(max_block, cap)

    B128 = _round_up(max(B, 1), 128)
    if B128 <= 128:
        block_b = 128
    elif B128 <= 2 * max_block:
        block_b = _round_up(_cdiv(B128, 2), 128)     # 2 tiles (v7x megacore)
    else:
        block_b = max_block
    B_pad = _round_up(B128, block_b)
    return block_b, B_pad, B_pad // block_b


def value_net_kernel(x_ref, w1_ref, w2_ref, b2_ref, o_ref):
    # x: [Sb, TB] (row S is all ones -> fc1 bias folded into w1_aug's column S)
    # fc1 + ReLU: single MXU matmul, batch lane-dense result.
    h = jnp.maximum(
        jnp.dot(w1_ref[...], x_ref[...], preferred_element_type=jnp.float32), 0.0
    )                                                              # [H, TB]
    # fc2 on the MXU (M=1 wastes MXU rows, but the MXU has slack here and this
    # keeps the H*TB multiply + cross-sublane reduce off the binding VALU slot).
    v = jnp.dot(w2_ref[...], h, preferred_element_type=jnp.float32)  # [1, TB]
    o_ref[...] = (v + b2_ref[0]).astype(o_ref.dtype)


def value_net_forward_tb(xT, w1, b1, w2, b2, *, max_block=16384, out_slab=False):
    """Fast path. xT: [S, B] (state-major, batch-on-lanes producer layout).

    w1: [H, S]; b1: [H]; w2: [1, H]; b2: [1]  (torch parameter layouts).
    Returns [B, 1] (torch semantics) or the raw (1, B_pad) slab if out_slab.
    """
    S, B = xT.shape
    H = w1.shape[0]
    block_b, B_pad, num_tiles = _choose_block_b(B, H, max_block)

    # Fold b1 into the fc1 matmul: append a ones-row to x and a b1 column to w1,
    # then zero-pad the contraction dim to a full sublane group.
    Sb = _round_up(S + 1, 8)
    pad_rows = Sb - S - 1
    x_aug = jnp.concatenate(
        [xT,
         jnp.ones((1, B), xT.dtype),
         jnp.zeros((pad_rows, B), xT.dtype)], axis=0)              # [Sb, B]
    if B_pad != B:
        x_aug = jnp.pad(x_aug, ((0, 0), (0, B_pad - B)))           # [Sb, B_pad]
    w1_aug = jnp.concatenate(
        [w1,
         b1.reshape(H, 1),
         jnp.zeros((H, pad_rows), w1.dtype)], axis=1)              # [H, Sb]
    w2_row = w2.reshape(1, H)                                      # [1, H]
    b2_s = b2.reshape(1)                                           # [1] (SMEM)

    out = pl.pallas_call(
        value_net_kernel,
        out_shape=jax.ShapeDtypeStruct((1, B_pad), jnp.float32),
        grid=(num_tiles,),
        in_specs=[
            pl.BlockSpec((Sb, block_b), lambda i: (0, i)),         # x tile (batch on lanes)
            pl.BlockSpec((H, Sb), lambda i: (0, 0)),               # w1+b1: VMEM resident
            pl.BlockSpec((1, H), lambda i: (0, 0)),                # w2 row: VMEM resident
            pl.BlockSpec(memory_space=pltpu.MemorySpace.SMEM),     # b2 scalar
        ],
        out_specs=pl.BlockSpec((1, block_b), lambda i: (0, i)),    # lane-dense output
        compiler_params=pltpu.CompilerParams(
            dimension_semantics=("parallel",),
            vmem_limit_bytes=40 * 1024 * 1024,
        ),
    )(x_aug, w1_aug, w2_row, b2_s)

    if out_slab:
        return out                       # (1, B_pad); consumer slices lanes [:B]
    return out[0, :B].reshape(B, 1)


def value_net_forward(x, w1, b1, w2, b2, **kwargs):
    """Torch-layout adapter: x is [B, S].

    For tight PPO loops, keep activations in [S, B] upstream and call
    value_net_forward_tb directly to avoid this transpose pass."""
    return value_net_forward_tb(x.T, w1, b1, w2, b2, **kwargs)


def init_params(key, state_dim, hidden_dim):
    """torch.nn.Linear default init U(-1/sqrt(fan_in), +), torch layouts."""
    k1, k2, k3, k4 = jax.random.split(key, 4)
    bound1 = 1.0 / jnp.sqrt(state_dim)
    bound2 = 1.0 / jnp.sqrt(hidden_dim)
    w1 = jax.random.uniform(k1, (hidden_dim, state_dim), jnp.float32, -bound1, bound1)
    b1 = jax.random.uniform(k2, (hidden_dim,), jnp.float32, -bound1, bound1)
    w2 = jax.random.uniform(k3, (1, hidden_dim), jnp.float32, -bound2, bound2)
    b2 = jax.random.uniform(k4, (1,), jnp.float32, -bound2, bound2)
    return w1, b1, w2, b2


def _ref_forward(x, w1, b1, w2, b2):
    return jnp.maximum(x @ w1.T + b1, 0.0) @ w2.T + b2


if __name__ == "__main__":
    # CartPole-v0: state_dim = 4; hidden_dim = 128 per the module spec.
    state_dim = 4
    hidden_dim = 128

    key = jax.random.PRNGKey(0)
    kx1, kx2, kp = jax.random.split(key, 3)
    w1, b1, w2, b2 = init_params(kp, state_dim, hidden_dim)

    # Small single-tile case.
    x_small = jax.random.normal(kx1, (8, state_dim), dtype=jnp.float32)
    out_small = jax.block_until_ready(value_net_forward(x_small, w1, b1, w2, b2))
    ref_small = _ref_forward(x_small, w1, b1, w2, b2)
    assert out_small.shape == (8, 1)
    assert jnp.allclose(out_small, ref_small, atol=1e-5, rtol=1e-5), "mismatch (small)"

    # Multi-tile case (exercises the 2-tile 'parallel' grid + batch padding).
    x_big = jax.random.normal(kx2, (200, state_dim), dtype=jnp.float32)
    out_big = jax.block_until_ready(value_net_forward(x_big, w1, b1, w2, b2))
    ref_big = _ref_forward(x_big, w1, b1, w2, b2)
    assert out_big.shape == (200, 1)
    assert jnp.allclose(out_big, ref_big, atol=1e-5, rtol=1e-5), "mismatch (multi-tile)"

    print("KERNEL_OK")
</pallas_src>

<mosaic_0001>
module attributes {stable_mosaic.version = 11 : i64} {
  func.func @value_net_kernel(%arg0: i32, %arg1: memref<8x128xf32, #tpu.memory_space<vmem>>, %arg2: memref<128x8xf32, #tpu.memory_space<vmem>>, %arg3: memref<1x128xf32, #tpu.memory_space<vmem>>, %arg4: memref<1xf32, #tpu.memory_space<smem>>, %arg5: memref<1x128xf32, #tpu.memory_space<vmem>>) attributes {dimension_semantics = [#tpu.dimension_semantics<parallel>], iteration_bounds = array<i64: 1>, scalar_prefetch = 0 : i64, scratch_operands = 0 : i64, tpu.core_type = #tpu.core_type<tc>, window_params = [{transform_indices = @transform_0, window_bounds = array<i64: 8, 128>}, {pipeline_mode = #tpu.pipeline_mode<synchronous>, transform_indices = @transform_1, window_bounds = array<i64: 128, 8>}, {pipeline_mode = #tpu.pipeline_mode<synchronous>, transform_indices = @transform_2, window_bounds = array<i64: 1, 128>}, {transform_indices = @transform_3, window_bounds = array<i64: 1>}, {transform_indices = @transform_4, window_bounds = array<i64: 1, 128>}]} {
    %c0 = arith.constant 0 : index
    %c0_0 = arith.constant 0 : index
    %0 = vector.load %arg2[%c0, %c0_0] : memref<128x8xf32, #tpu.memory_space<vmem>>, vector<128x8xf32>
    %c0_1 = arith.constant 0 : index
    %c0_2 = arith.constant 0 : index
    %1 = vector.load %arg1[%c0_1, %c0_2] : memref<8x128xf32, #tpu.memory_space<vmem>>, vector<8x128xf32>
    %cst = arith.constant dense<0.000000e+00> : vector<128x128xf32>
    %2 = tpu.matmul %0, %1, %cst {dimension_numbers = #tpu.dot_dimension_numbers<[1], [0], [0], [1], [0, 0, 1, 1], [], []>} : vector<128x8xf32>, vector<8x128xf32>, vector<128x128xf32> -> vector<128x128xf32>
    %cst_3 = arith.constant 0.000000e+00 : f32
    %3 = vector.broadcast %cst_3 : f32 to vector<128x128xf32>
    %4 = arith.maximumf %2, %3 : vector<128x128xf32>
    %c0_4 = arith.constant 0 : index
    %c0_5 = arith.constant 0 : index
    %5 = vector.load %arg3[%c0_4, %c0_5] : memref<1x128xf32, #tpu.memory_space<vmem>>, vector<1x128xf32>
    %cst_6 = arith.constant dense<0.000000e+00> : vector<1x128xf32>
    %6 = tpu.matmul %5, %4, %cst_6 {dimension_numbers = #tpu.dot_dimension_numbers<[1], [0], [0], [1], [0, 0, 1, 1], [], []>} : vector<1x128xf32>, vector<128x128xf32>, vector<1x128xf32> -> vector<1x128xf32>
    %c0_7 = arith.constant 0 : index
    %7 = memref.load %arg4[%c0_7] : memref<1xf32, #tpu.memory_space<smem>>
    %8 = vector.broadcast %7 : f32 to vector<1x128xf32>
    %9 = arith.addf %6, %8 : vector<1x128xf32>
    %c0_8 = arith.constant 0 : index
    %c0_9 = arith.constant 0 : index
    %10 = vector.load %arg5[%c0_8, %c0_9] : memref<1x128xf32, #tpu.memory_space<vmem>>, vector<1x128xf32>
    tpu.vector_store %arg5[%c0_8, %c0_9], %9 {strides = array<i32>} : memref<1x128xf32, #tpu.memory_space<vmem>>, vector<1x128xf32>,
    return
  }
  func.func @transform_0(%arg0: i32) -> (i32, i32) {
    %c0_i32 = arith.constant 0 : i32
    %c0_i32_0 = arith.constant 0 : i32
    return %c0_i32, %arg0 : i32, i32
  }
  func.func @transform_1(%arg0: i32) -> (i32, i32) {
    %c0_i32 = arith.constant 0 : i32
    %c0_i32_0 = arith.constant 0 : i32
    %c0_i32_1 = arith.constant 0 : i32
    return %c0_i32, %c0_i32_0 : i32, i32
  }
  func.func @transform_2(%arg0: i32) -> (i32, i32) {
    %c0_i32 = arith.constant 0 : i32
    %c0_i32_0 = arith.constant 0 : i32
    %c0_i32_1 = arith.constant 0 : i32
    return %c0_i32, %c0_i32_0 : i32, i32
  }
  func.func @transform_3(%arg0: i32) -> i32 {
    %c0_i32 = arith.constant 0 : i32
    %c0_i32_0 = arith.constant 0 : i32
    return %c0_i32 : i32
  }
  func.func @transform_4(%arg0: i32) -> (i32, i32) {
    %c0_i32 = arith.constant 0 : i32
    %c0_i32_0 = arith.constant 0 : i32
    return %c0_i32, %arg0 : i32, i32
  }
}

</mosaic_0001>

<bundles_post_ra>
// kernel: tpu_custom_call.1
= control target key start
LH: loop header
LB: loop body
LE: loop exit
PB: predicated region body
PF: predicated region fallthrough
CT: control target
= control target key end

     0   :  { %vm36_vm0 = vcmask 64512   ;;  %s591_s0 = inlined_call_operand.vmem [shape: f32[8,128], index: 0, kind: input, shape index: {}]   ;;  %s592_s1 = inlined_call_operand.vmem [shape: f32[128,8], index: 1, kind: input, shape index: {}]   ;;  %s593_s2 = inlined_call_operand.vmem [shape: f32[1,128], index: 2, kind: input, shape index: {}]   ;;  %s594_s3 = inlined_call_operand.<no memory space> [shape: f32[1], index: 3, kind: input, shape index: {}]   ;;  %s595_s4 = inlined_call_operand.hbm [shape: f32[1,128], index: 4, kind: output, shape index: {}]  }
   0x1   :  { %v35_v0 = vld [vmem:[%s591_s0] sm:$0xff]  ;;  %v20_v2 = vld [vmem:[%s592_s1 + $0x8] sm:$0xff]  ;;  %v21_v3 = vld [vmem:[%s592_s1 + $0x10] sm:$0xff] }
   0x2   :  { %v19_v1 = vld [vmem:[%s592_s1] sm:$0xff]  ;;  %384 = vmatprep.subr.mxu0 %v35_v0  ;;  %v22_v4 = vld [vmem:[%s592_s1 + $0x18] sm:$0xff] }
   0x3   :  { %386 = vmatprep.mubr.msk.f32.mxu0 %vm36_vm0, %v19_v1  ;;  %385 = vmatpush3.msra.mxu0 %v35_v0  ;;  %v23_v5 = vld [vmem:[%s592_s1 + $0x20] sm:$0xff] }
   0x4   :  { %387 = vmatmul.mubr.msk.f32.vlgmr.msra.gmra.mxu0 %vm36_vm0, %v20_v2 }
   0x5   :  { %389 = vmatprep.mubr.msk.f32.mxu0 %vm36_vm0, %v21_v3 }
   0x6   :  { %10 = vsyncpa [#allocation4], 0  ;;  %v24_v6 = vld [vmem:[%s592_s1 + $0x28] sm:$0xff]  ;;  %v25_v7 = vld [vmem:[%s592_s1 + $0x30] sm:$0xff]  ;;  %v470_v17 = vmov 0.0   ;;  %vm471_vm1 = vmmov 0   ;;  %v248_v51 = vstv %s594_s3 }
   0x7   :  { %v26_v8 = vld [vmem:[%s592_s1 + $0x38] sm:$0xff]  ;;  %v27_v9 = vld [vmem:[%s592_s1 + $0x40] sm:$0xff]  ;;  %v28_v10 = vld [vmem:[%s592_s1 + $0x48] sm:$0xff]  ;;  %410 = vmatprep.subr.mxu1 %v470_v17  ;;  %442 = vmatprep.mubr.msk.f32.mxu1 %vm471_vm1, %v470_v17  ;;  %s472_s24 = smov [#allocation3]  }
   0x8   :  { %390 = vmatmul.mubr.msk.f32.gmra.mxu0 %vm36_vm0, %v22_v4  ;;  %v29_v11 = vld [vmem:[%s592_s1 + $0x50] sm:$0xff]  ;;  %v30_v12 = vld [vmem:[%s592_s1 + $0x58] sm:$0xff]  ;;  %v31_v13 = vld [vmem:[%s592_s1 + $0x60] sm:$0xff]  ;;  %s326_s25 = sshll.u32 %s472_s24, 4  ;;  %s327_s25 = int_to_ptr.vmem [resolvable:$true] %s326_s25 }
   0x9   :  { %392 = vmatprep.mubr.msk.f32.mxu0 %vm36_vm0, %v23_v5  ;;  %v32_v14 = vld [vmem:[%s592_s1 + $0x68] sm:$0xff]  ;;  %v33_v15 = vld [vmem:[%s592_s1 + $0x70] sm:$0xff]  ;;  %v34_v16 = vld [vmem:[%s592_s1 + $0x78] sm:$0xff]  ;;  %s448_s26 = scalar_lea.vmem %s327_s25, 16  ;;  %s452_s27 = scalar_lea.vmem %s327_s25, 32 }
   0xa   :  { %v246_v50 = vld [vmem:[%s593_s2] sm:$0x1]  ;;  %p449_p0 = scmp.ne.s32.totalorder %s327_s25, %s448_s26  ;;  %p453_p1 = scmp.lt.s32.totalorder %s327_s25, %s327_s25 }
   0xb   :  { %p454_p2 = scmp.lt.s32.totalorder %s452_s27, %s448_s26 }
   0xc   :  { %393 = vmatmul.mubr.msk.f32.gmra.mxu0 %vm36_vm0, %v24_v6 }
   0xd   :  { %395 = vmatprep.mubr.msk.f32.mxu0 %vm36_vm0, %v25_v7  ;;  %p455_p3 = por %p454_p2, %p453_p1 }
   0xf   :  { %p456_p4 = pnand %p455_p3, %p449_p0 }
  0x10   :  { %396 = vmatmul.mubr.msk.f32.gmra.mxu0 %vm36_vm0, %v26_v8 }
  0x11   :  { %398 = vmatprep.mubr.msk.f32.mxu0 %vm36_vm0, %v27_v9 }
  0x14   :  { %399 = vmatmul.mubr.msk.f32.gmra.mxu0 %vm36_vm0, %v28_v10 }
  0x15   :  { %401 = vmatprep.mubr.msk.f32.mxu0 %vm36_vm0, %v29_v11 }
  0x18   :  { %402 = vmatmul.mubr.msk.f32.gmra.mxu0 %vm36_vm0, %v30_v12 }
  0x19   :  { %404 = vmatprep.mubr.msk.f32.mxu0 %vm36_vm0, %v31_v13 }
  0x1c   :  { %405 = vmatmul.mubr.msk.f32.gmra.mxu0 %vm36_vm0, %v32_v14 }
  0x1d   :  { %407 = vmatprep.mubr.msk.f32.mxu0 %vm36_vm0, %v33_v15 }
  0x20   :  { %408 = vmatmul.mubr.msk.f32.gmra.mxu0 %vm36_vm0, %v34_v16 }
  0xc4   :  { %v388_v18 = vpop.f32.mrf.mxu0 }
  0xc5   :  { %v231_v48 = vmax.f32 %v388_v18, 0.0 }
  0xc6   :  { %v151_v19 = vpop.f32.mrf.mxu0 }
  0xc7   :  { %v230_v49 = vmax.f32 %v151_v19, 0.0 }
  0xc8   :  { %v391_v20 = vpop.f32.mrf.mxu0 }
  0xc9   :  { %v233_v46 = vmax.f32 %v391_v20, 0.0 }
  0xca   :  { %v161_v21 = vpop.f32.mrf.mxu0 }
  0xcb   :  { %v232_v47 = vmax.f32 %v161_v21, 0.0 }
  0xcc   :  { %v394_v22 = vpop.f32.mrf.mxu0 }
  0xcd   :  { %v235_v44 = vmax.f32 %v394_v22, 0.0 }
  0xce   :  { %v171_v23 = vpop.f32.mrf.mxu0 }
  0xcf   :  { %v234_v45 = vmax.f32 %v171_v23, 0.0 }
  0xd0   :  { %v397_v24 = vpop.f32.mrf.mxu0 }
  0xd1   :  { %v237_v42 = vmax.f32 %v397_v24, 0.0 }
  0xd2   :  { %v181_v25 = vpop.f32.mrf.mxu0 }
  0xd3   :  { %v236_v43 = vmax.f32 %v181_v25, 0.0 }
  0xd4   :  { %v400_v26 = vpop.f32.mrf.mxu0 }
  0xd5   :  { %v239_v40 = vmax.f32 %v400_v26, 0.0 }
  0xd6   :  { %v191_v27 = vpop.f32.mrf.mxu0 }
  0xd7   :  { %v238_v41 = vmax.f32 %v191_v27, 0.0 }
  0xd8   :  { %v403_v28 = vpop.f32.mrf.mxu0 }
  0xd9   :  { %v241_v38 = vmax.f32 %v403_v28, 0.0 }
  0xda   :  { %v201_v29 = vpop.f32.mrf.mxu0 }
  0xdb   :  { %v240_v39 = vmax.f32 %v201_v29, 0.0 }
  0xdc   :  { %v406_v30 = vpop.f32.mrf.mxu0 }
  0xdd   :  { %v243_v36 = vmax.f32 %v406_v30, 0.0 }
  0xde   :  { %v211_v31 = vpop.f32.mrf.mxu0 }
  0xdf   :  { %v242_v37 = vmax.f32 %v211_v31, 0.0 }
  0xe0   :  { %v409_v32 = vpop.f32.mrf.mxu0 }
  0xe1   :  { %v245_v33 = vmax.f32 %v409_v32, 0.0 }
  0xe2   :  { %v221_v34 = vpop.f32.mrf.mxu0 }
  0xe3   :  { %v244_v35 = vmax.f32 %v221_v34, 0.0  ;;  %411 = vmatpush3.msra.mxu1 %v245_v33 }
  0xe4   :  { %412 = vmatprep.subr.mxu1 %v470_v17 }
  0xe5   :  { %413 = vmatpush3.msra.mxu1 %v244_v35 }
  0xe6   :  { %414 = vmatprep.subr.mxu1 %v470_v17 }
  0xe7   :  { %415 = vmatpush3.msra.mxu1 %v243_v36 }
  0xe8   :  { %416 = vmatprep.subr.mxu1 %v470_v17 }
  0xe9   :  { %417 = vmatpush3.msra.mxu1 %v242_v37 }
  0xea   :  { %418 = vmatprep.subr.mxu1 %v470_v17 }
  0xeb   :  { %419 = vmatpush3.msra.mxu1 %v241_v38 }
  0xec   :  { %420 = vmatprep.subr.mxu1 %v470_v17 }
  0xed   :  { %421 = vmatpush3.msra.mxu1 %v240_v39 }
  0xee   :  { %422 = vmatprep.subr.mxu1 %v470_v17 }
  0xef   :  { %423 = vmatpush3.msra.mxu1 %v239_v40 }
  0xf0   :  { %424 = vmatprep.subr.mxu1 %v470_v17 }
  0xf1   :  { %425 = vmatpush3.msra.mxu1 %v238_v41 }
  0xf2   :  { %426 = vmatprep.subr.mxu1 %v470_v17 }
  0xf3   :  { %427 = vmatpush3.msra.mxu1 %v237_v42 }
  0xf4   :  { %428 = vmatprep.subr.mxu1 %v470_v17 }
  0xf5   :  { %429 = vmatpush3.msra.mxu1 %v236_v43 }
  0xf6   :  { %430 = vmatprep.subr.mxu1 %v470_v17 }
  0xf7   :  { %431 = vmatpush3.msra.mxu1 %v235_v44 }
  0xf8   :  { %432 = vmatprep.subr.mxu1 %v470_v17 }
  0xf9   :  { %433 = vmatpush3.msra.mxu1 %v234_v45 }
  0xfa   :  { %434 = vmatprep.subr.mxu1 %v470_v17 }
  0xfb   :  { %435 = vmatpush3.msra.mxu1 %v233_v46 }
  0xfc   :  { %436 = vmatprep.subr.mxu1 %v470_v17 }
  0xfd   :  { %437 = vmatpush3.msra.mxu1 %v232_v47 }
  0xfe   :  { %438 = vmatprep.subr.mxu1 %v470_v17 }
  0xff   :  { %439 = vmatpush3.msra.mxu1 %v231_v48 }
 0x100   :  { %440 = vmatprep.subr.mxu1 %v470_v17 }
 0x101   :  { %441 = vmatpush3.msra.mxu1 %v230_v49 }
 0x102   :  { %443 = vmatmul.mubr.f32.vlgmr.msra.gmra.mxu1 %v246_v50 }
 0x1c2   :  { %v315_v52 = vpop.f32.mrf.mxu1 }
 0x1c3   :  { %v316_v53 = vadd.f32 %v315_v52, %v248_v51 }
 0x1c4   :  { %v444_v54 = vpop.f32.mrf.mxu1 }
 0x1c5   :  { %319 = vst [vmem:[#allocation3] sm:$0x1] %v316_v53 }
 0x1c6   :  { %459 = shalt.err (!%p456_p4)
}
 0x1c7   :  { %329 = dma.vmem_to_hbm [thread:$0]  %s327_s25, 16, %s595_s4, [#allocation4]  }
 0x1c8   :  { %468 = dma.done.wait [#allocation4], 16  }
 0x1c9   :  { %469 = vsyncadd [#allocation4], 4294967280 }
 0x1ca   :  { %333 = vsyncpa [#allocation4], 1 }

</bundles_post_ra>
